<compile_context>
chip_gen: v6e
topology: v6e:2x2x1
jax: 0.10.0
libtpu: 0.0.40
codegen_flags: <defaults>
</compile_context>

<pallas_src>
import functools
from math import sqrt

import jax
import jax.numpy as jnp
from jax import lax
from jax.experimental import pallas as pl
from jax.experimental.pallas import tpu as pltpu


_MASK_FILL = -1.0e9  # torch masked_fill value from the reference


def _attention_kernel(*refs, mask_value, mask_mode, tq):
    # mask_mode: 0 = none, 1 = materialized int8 mask, 2 = causal (in-kernel iota)
    if mask_mode == 1:
        q_ref, k_ref, v_ref, m_ref, out_ref, attn_ref = refs
    else:
        q_ref, k_ref, v_ref, out_ref, attn_ref = refs

    q = q_ref[0, 0]          # (tq, D)  -- native dtype straight into the MXU
    k = k_ref[0, 0]          # (Sk, D)
    v = v_ref[0, 0]          # (Sk, D)

    # scores = q @ k^T, f32 accumulation on the MXU.  The reference's
    # 1/temperature scaling is omitted: the L2 row-norm below divides any
    # positive common factor back out (mask fill value is pre-scaled by
    # temperature in the wrapper so the masked path is exactly equivalent).
    scores = lax.dot_general(q, k, (((1,), (1,)), ((), ())),
                             preferred_element_type=jnp.float32)

    if mask_mode == 1:
        scores = jnp.where(m_ref[0, 0] == 0, jnp.float32(mask_value), scores)
    elif mask_mode == 2:
        # Causal mask generated in-kernel: no HBM mask tensor, no VMEM buffer.
        Sk = scores.shape[-1]
        row = pl.program_id(2) * tq + lax.broadcasted_iota(jnp.int32, (tq, Sk), 0)
        col = lax.broadcasted_iota(jnp.int32, (tq, Sk), 1)
        scores = jnp.where(col > row, jnp.float32(mask_value), scores)

    # NOTE: `attn = attn / abs(attn.min())` from the reference is intentionally
    # omitted: the L2 row-normalization is scale invariant, so dividing every
    # element by a positive global scalar changes nothing (the degenerate
    # min == 0 -> NaN case of the reference is not reproduced).

    # F.normalize(attn, dim=-1): x / max(||x||_2, eps).  rsqrt -> EUP slot.
    sumsq = jnp.sum(scores * scores, axis=-1, keepdims=True)
    normed = scores * lax.rsqrt(jnp.maximum(sumsq, jnp.float32(1e-24)))

    # softmax(dim=-1): normed is in [-1, 1] so exp() cannot overflow -> the
    # usual max-subtraction pass is dropped (softmax is shift invariant).
    e = jnp.exp(normed)
    p = e * pl.reciprocal(jnp.sum(e, axis=-1, keepdims=True), approx=False)

    # TODO(synk): nn.Dropout(p=0.1) is treated as identity (inference mode).

    out = jnp.dot(p.astype(v.dtype), v, preferred_element_type=jnp.float32)

    out_ref[0, 0] = out.astype(out_ref.dtype)
    # Dominant HBM writeback: stored in attn_ref.dtype (defaults to input dtype).
    attn_ref[0, 0] = p.astype(attn_ref.dtype)


def _vmem_limit_bytes():
    """Scoped VMEM limit per generation: ~100 MiB on v5e/v6e (128 MiB physical),
    ~48 MiB on v7x (64 MiB physical).  Conservative fallback if the hardware
    query is unavailable."""
    try:
        cap = int(pltpu.get_tpu_info().vmem_capacity_bytes)
    except Exception:
        cap = 64 * 1024 * 1024
    return max(32 * 1024 * 1024, min(cap - 16 * 1024 * 1024, 100 * 1024 * 1024))


def _pick_q_tile(Sq, Sk, D, in_bytes, out_bytes, attn_bytes, has_mask, budget):
    """Largest q-tile whose full set of double-buffered VMEM consumers fits
    `budget`: K/V input blocks, q/out/attn/mask blocks, and ~3 live f32 (tq,Sk)
    intermediates inside the body."""
    fixed = 2 * 2 * Sk * D * in_bytes                 # K and V double buffers
    per_row = (2 * D * in_bytes                       # q block
               + 2 * D * out_bytes                    # out block
               + 2 * Sk * attn_bytes                  # attn writeback block
               + (2 * Sk if has_mask else 0)          # int8 mask block
               + 3 * Sk * 4)                          # live f32 intermediates
    max_rows = max((budget - fixed) // per_row, 8)
    if Sq <= max_rows:
        return Sq                                     # single full-height tile
    for cand in (1024, 512, 256, 128, 64, 32, 16, 8):
        if cand <= max_rows:
            return cand                               # cdiv grid + padded tail
    return 8


def attention(q, k, v, mask=None, *, temperature, causal=False, attn_dtype=None):
    """Pallas equivalent of Attention.forward.  Returns (output, attn, v).

    attn_dtype defaults to q.dtype (halves the dominant HBM writeback for bf16
    inputs); pass jnp.float32 to force a full-precision attention map.
    """
    if causal and mask is not None:
        raise ValueError("pass either `mask` or `causal=True`, not both")
    B, H, Sq, D = q.shape
    Sk = k.shape[2]
    attn_dtype = jnp.dtype(q.dtype if attn_dtype is None else attn_dtype)

    limit = _vmem_limit_bytes()
    budget = max(limit - 8 * 1024 * 1024, 24 * 1024 * 1024)
    has_mask = mask is not None
    tq = _pick_q_tile(Sq, Sk, D, q.dtype.itemsize, q.dtype.itemsize,
                      attn_dtype.itemsize, has_mask, budget)
    grid = (B, H, pl.cdiv(Sq, tq))   # ragged last q-tile is padded by Pallas;
                                     # computation is row-independent and OOB
                                     # rows' stores are discarded.

    q_spec = pl.BlockSpec((1, 1, tq, D), lambda b, h, qi: (b, h, qi, 0))
    kv_spec = pl.BlockSpec((1, 1, Sk, D), lambda b, h, qi: (b, h, 0, 0))
    out_spec = pl.BlockSpec((1, 1, tq, D), lambda b, h, qi: (b, h, qi, 0))
    attn_spec = pl.BlockSpec((1, 1, tq, Sk), lambda b, h, qi: (b, h, qi, 0))

    in_specs = [q_spec, kv_spec, kv_spec]
    operands = [q, k, v]

    # Masked-fill value pre-scaled by temperature so skipping the q/temperature
    # multiply stays exactly equivalent to the reference under the L2 row-norm.
    mask_value = float(_MASK_FILL) * float(temperature)

    if has_mask:
        # int8 non-zero indicator; batch/head broadcast resolved in index_map.
        mask = jnp.asarray(mask)
        mask = mask.reshape((1,) * (4 - mask.ndim) + tuple(mask.shape))
        Bm, Hm = int(mask.shape[0]), int(mask.shape[1])
        mask_nz = jnp.broadcast_to(mask != 0, (Bm, Hm, Sq, Sk)).astype(jnp.int8)
        # NOTE: with qi innermost (lets K/V blocks be revisit-skipped across q
        # tiles) a head-broadcast mask block is re-fetched once per head;
        # prefer `causal=True` (in-kernel iota) when applicable.
        mask_spec = pl.BlockSpec(
            (1, 1, tq, Sk),
            lambda b, h, qi: (b if Bm > 1 else 0, h if Hm > 1 else 0, qi, 0))
        in_specs.append(mask_spec)
        operands.append(mask_nz)
        mask_mode = 1
    elif causal:
        mask_mode = 2
    else:
        mask_mode = 0

    kernel = functools.partial(_attention_kernel, mask_value=mask_value,
                               mask_mode=mask_mode, tq=tq)

    out, attn = pl.pallas_call(
        kernel,
        out_shape=(
            jax.ShapeDtypeStruct((B, H, Sq, D), q.dtype),
            jax.ShapeDtypeStruct((B, H, Sq, Sk), attn_dtype),
        ),
        grid_spec=pltpu.PrefetchScalarGridSpec(
            num_scalar_prefetch=0,
            grid=grid,
            in_specs=in_specs,
            out_specs=[out_spec, attn_spec],
        ),
        compiler_params=pltpu.CompilerParams(
            # No reduction grid axis -> everything parallel (megacore shards
            # across TensorCores on v7x for free).
            dimension_semantics=("parallel", "parallel", "parallel"),
            vmem_limit_bytes=limit),
    )(*operands)

    return out, attn, v


def attention_ref(q, k, v, mask=None, *, temperature):
    """Pure-JAX reference mirroring the PyTorch forward (dropout = identity),
    including the (mathematically redundant) global-min division."""
    attn = jnp.einsum("bhqd,bhkd->bhqk", q / temperature, k)
    if mask is not None:
        attn = jnp.where(mask == 0, -1.0e9, attn)
    attn = attn / jnp.abs(jnp.min(attn))
    norm = jnp.sqrt(jnp.sum(attn * attn, axis=-1, keepdims=True))
    attn = attn / jnp.maximum(norm, 1e-12)
    attn = jax.nn.softmax(attn, axis=-1)
    out = jnp.einsum("bhqk,bhkd->bhqd", attn, v)
    return out, attn, v


if __name__ == "__main__":
    B, H, S, D = 2, 2, 8, 32
    temperature = sqrt(D)

    key = jax.random.PRNGKey(0)
    kq, kk, kv = jax.random.split(key, 3)
    q = jax.random.normal(kq, (B, H, S, D), dtype=jnp.float32)
    k = jax.random.normal(kk, (B, H, S, D), dtype=jnp.float32)
    v = jax.random.normal(kv, (B, H, S, D), dtype=jnp.float32)

    # --- no-mask path ---
    out, attn, v_out = attention(q, k, v, temperature=temperature)
    jax.block_until_ready((out, attn, v_out))
    out_r, attn_r, _ = attention_ref(q, k, v, temperature=temperature)
    assert out.shape == (B, H, S, D) and attn.shape == (B, H, S, S)
    assert attn.dtype == q.dtype
    assert jnp.allclose(out, out_r, rtol=2e-5, atol=2e-5)
    assert jnp.allclose(attn, attn_r, rtol=2e-5, atol=2e-5)
    assert jnp.array_equal(v_out, v)

    # --- materialized mask path ([B, 1, S, S], head broadcast in index_map) ---
    mask = jnp.broadcast_to(
        jnp.tril(jnp.ones((S, S), dtype=jnp.int32))[None, None], (B, 1, S, S))
    out_m, attn_m, _ = attention(q, k, v, mask, temperature=temperature)
    jax.block_until_ready((out_m, attn_m))
    out_mr, attn_mr, _ = attention_ref(q, k, v, mask, temperature=temperature)
    assert jnp.allclose(out_m, out_mr, rtol=2e-5, atol=2e-5)
    assert jnp.allclose(attn_m, attn_mr, rtol=2e-5, atol=2e-5)

    # --- causal fast path: mask built in-kernel from iota (no HBM mask) ---
    out_c, attn_c, _ = attention(q, k, v, causal=True, temperature=temperature)
    jax.block_until_ready((out_c, attn_c))
    assert jnp.allclose(out_c, out_mr, rtol=2e-5, atol=2e-5)
    assert jnp.allclose(attn_c, attn_mr, rtol=2e-5, atol=2e-5)

    # --- bf16 inputs: attn writeback follows input dtype (main perf lever) ---
    qb, kb, vb = (x.astype(jnp.bfloat16) for x in (q, k, v))
    out_b, attn_b, _ = attention(qb, kb, vb, temperature=temperature)
    jax.block_until_ready((out_b, attn_b))
    assert out_b.dtype == jnp.bfloat16 and attn_b.dtype == jnp.bfloat16
    assert bool(jnp.all(jnp.isfinite(attn_b.astype(jnp.float32))))

    print("KERNEL_OK")
</pallas_src>

<mosaic_0001>
module attributes {stable_mosaic.version = 11 : i64} {
  func.func @_attention_kernel(%arg0: i32, %arg1: i32, %arg2: i32, %arg3: memref<1x1x8x32xf32, #tpu.memory_space<vmem>>, %arg4: memref<1x1x8x32xf32, #tpu.memory_space<vmem>>, %arg5: memref<1x1x8x32xf32, #tpu.memory_space<vmem>>, %arg6: memref<1x1x8x32xf32, #tpu.memory_space<vmem>>, %arg7: memref<1x1x8x8xf32, #tpu.memory_space<vmem>>) attributes {dimension_semantics = [#tpu.dimension_semantics<parallel>, #tpu.dimension_semantics<parallel>, #tpu.dimension_semantics<parallel>], iteration_bounds = array<i64: 2, 2, 1>, scalar_prefetch = 0 : i64, scratch_operands = 0 : i64, tpu.core_type = #tpu.core_type<tc>, window_params = [{transform_indices = @transform_0, window_bounds = array<i64: 1, 1, 8, 32>}, {transform_indices = @transform_1, window_bounds = array<i64: 1, 1, 8, 32>}, {transform_indices = @transform_2, window_bounds = array<i64: 1, 1, 8, 32>}, {transform_indices = @transform_3, window_bounds = array<i64: 1, 1, 8, 32>}, {transform_indices = @transform_4, window_bounds = array<i64: 1, 1, 8, 8>}]} {
    %c0 = arith.constant 0 : index
    %c0_0 = arith.constant 0 : index
    %c0_1 = arith.constant 0 : index
    %c0_2 = arith.constant 0 : index
    %0 = vector.load %arg3[%c0, %c0_0, %c0_1, %c0_2] : memref<1x1x8x32xf32, #tpu.memory_space<vmem>>, vector<1x1x8x32xf32>
    %1 = vector.shape_cast %0 : vector<1x1x8x32xf32> to vector<8x32xf32>
    %c0_3 = arith.constant 0 : index
    %c0_4 = arith.constant 0 : index
    %c0_5 = arith.constant 0 : index
    %c0_6 = arith.constant 0 : index
    %2 = vector.load %arg4[%c0_3, %c0_4, %c0_5, %c0_6] : memref<1x1x8x32xf32, #tpu.memory_space<vmem>>, vector<1x1x8x32xf32>
    %3 = vector.shape_cast %2 : vector<1x1x8x32xf32> to vector<8x32xf32>
    %c0_7 = arith.constant 0 : index
    %c0_8 = arith.constant 0 : index
    %c0_9 = arith.constant 0 : index
    %c0_10 = arith.constant 0 : index
    %4 = vector.load %arg5[%c0_7, %c0_8, %c0_9, %c0_10] : memref<1x1x8x32xf32, #tpu.memory_space<vmem>>, vector<1x1x8x32xf32>
    %5 = vector.shape_cast %4 : vector<1x1x8x32xf32> to vector<8x32xf32>
    %cst = arith.constant dense<0.000000e+00> : vector<8x8xf32>
    %6 = tpu.matmul %1, %3, %cst {dimension_numbers = #tpu.dot_dimension_numbers<[1], [1], [0], [0], [0, 0, 1, 0], [], []>} : vector<8x32xf32>, vector<8x32xf32>, vector<8x8xf32> -> vector<8x8xf32>
    %7 = arith.mulf %6, %6 : vector<8x8xf32>
    %cst_11 = arith.constant dense<0.000000e+00> : vector<8xf32>
    %8 = vector.multi_reduction <add>, %7, %cst_11 [1] : vector<8x8xf32> to vector<8xf32>
    %9 = vector.shape_cast %8 : vector<8xf32> to vector<8x1xf32>
    %cst_12 = arith.constant 1.000000e-24 : f32
    %10 = vector.broadcast %cst_12 : f32 to vector<8x1xf32>
    %11 = arith.maximumf %9, %10 : vector<8x1xf32>
    %12 = math.rsqrt %11 : vector<8x1xf32>
    %13 = vector.broadcast %12 : vector<8x1xf32> to vector<8x8xf32>
    %14 = arith.mulf %6, %13 : vector<8x8xf32>
    %15 = math.exp %14 : vector<8x8xf32>
    %cst_13 = arith.constant dense<0.000000e+00> : vector<8xf32>
    %16 = vector.multi_reduction <add>, %15, %cst_13 [1] : vector<8x8xf32> to vector<8xf32>
    %17 = vector.shape_cast %16 : vector<8xf32> to vector<8x1xf32>
    %18 = tpu.reciprocal %17 : vector<8x1xf32> -> vector<8x1xf32>
    %19 = vector.broadcast %18 : vector<8x1xf32> to vector<8x8xf32>
    %20 = arith.mulf %15, %19 : vector<8x8xf32>
    %cst_14 = arith.constant dense<0.000000e+00> : vector<8x32xf32>
    %21 = tpu.matmul %20, %5, %cst_14 {dimension_numbers = #tpu.dot_dimension_numbers<[1], [0], [0], [1], [0, 0, 1, 1], [], []>} : vector<8x8xf32>, vector<8x32xf32>, vector<8x32xf32> -> vector<8x32xf32>
    %c0_15 = arith.constant 0 : index
    %c0_16 = arith.constant 0 : index
    %c0_17 = arith.constant 0 : index
    %c0_18 = arith.constant 0 : index
    %22 = vector.load %arg6[%c0_15, %c0_16, %c0_17, %c0_18] : memref<1x1x8x32xf32, #tpu.memory_space<vmem>>, vector<1x1x8x32xf32>
    %23 = vector.shape_cast %22 : vector<1x1x8x32xf32> to vector<8x32xf32>
    %24 = vector.shape_cast %21 : vector<8x32xf32> to vector<1x1x8x32xf32>
    tpu.vector_store %arg6[%c0_15, %c0_16, %c0_17, %c0_18], %24 {strides = array<i32>} : memref<1x1x8x32xf32, #tpu.memory_space<vmem>>, vector<1x1x8x32xf32>,
    %c0_19 = arith.constant 0 : index
    %c0_20 = arith.constant 0 : index
    %c0_21 = arith.constant 0 : index
    %c0_22 = arith.constant 0 : index
    %25 = vector.load %arg7[%c0_19, %c0_20, %c0_21, %c0_22] : memref<1x1x8x8xf32, #tpu.memory_space<vmem>>, vector<1x1x8x8xf32>
    %26 = vector.shape_cast %25 : vector<1x1x8x8xf32> to vector<8x8xf32>
    %27 = vector.shape_cast %20 : vector<8x8xf32> to vector<1x1x8x8xf32>
    tpu.vector_store %arg7[%c0_19, %c0_20, %c0_21, %c0_22], %27 {strides = array<i32>} : memref<1x1x8x8xf32, #tpu.memory_space<vmem>>, vector<1x1x8x8xf32>,
    return
  }
  func.func @transform_0(%arg0: i32, %arg1: i32, %arg2: i32) -> (i32, i32, i32, i32) {
    %c0_i32 = arith.constant 0 : i32
    %c0_i32_0 = arith.constant 0 : i32
    return %arg0, %arg1, %arg2, %c0_i32 : i32, i32, i32, i32
  }
  func.func @transform_1(%arg0: i32, %arg1: i32, %arg2: i32) -> (i32, i32, i32, i32) {
    %c0_i32 = arith.constant 0 : i32
    %c0_i32_0 = arith.constant 0 : i32
    %c0_i32_1 = arith.constant 0 : i32
    return %arg0, %arg1, %c0_i32, %c0_i32_0 : i32, i32, i32, i32
  }
  func.func @transform_2(%arg0: i32, %arg1: i32, %arg2: i32) -> (i32, i32, i32, i32) {
    %c0_i32 = arith.constant 0 : i32
    %c0_i32_0 = arith.constant 0 : i32
    %c0_i32_1 = arith.constant 0 : i32
    return %arg0, %arg1, %c0_i32, %c0_i32_0 : i32, i32, i32, i32
  }
  func.func @transform_3(%arg0: i32, %arg1: i32, %arg2: i32) -> (i32, i32, i32, i32) {
    %c0_i32 = arith.constant 0 : i32
    %c0_i32_0 = arith.constant 0 : i32
    return %arg0, %arg1, %arg2, %c0_i32 : i32, i32, i32, i32
  }
  func.func @transform_4(%arg0: i32, %arg1: i32, %arg2: i32) -> (i32, i32, i32, i32) {
    %c0_i32 = arith.constant 0 : i32
    %c0_i32_0 = arith.constant 0 : i32
    return %arg0, %arg1, %arg2, %c0_i32 : i32, i32, i32, i32
  }
}

</mosaic_0001>

<bundles_post_ra>
// kernel: tpu_custom_call.1
= control target key start
LH: loop header
LB: loop body
LE: loop exit
PB: predicated region body
PF: predicated region fallthrough
CT: control target
= control target key end

     0   :  { %s1373_s0 = inlined_call_operand.hbm [shape: f32[2,2,8,32], index: 0, kind: input, shape index: {}]   ;;  %s1374_s1 = inlined_call_operand.hbm [shape: f32[2,2,8,32], index: 1, kind: input, shape index: {}]   ;;  %s1375_s2 = inlined_call_operand.hbm [shape: f32[2,2,8,32], index: 2, kind: input, shape index: {}]   ;;  %s1376_s3 = inlined_call_operand.hbm [shape: f32[2,2,8,32], index: 3, kind: output, shape index: {0}]   ;;  %s1377_s4 = inlined_call_operand.hbm [shape: f32[2,2,8,8], index: 4, kind: output, shape index: {1}]  }
   0x1   :  { %1384 = sst [smem:[#allocation21_spill]] %s1374_s1 }
   0x2   :  { %10 = vsyncpa [#allocation3], 0 }
   0x3   :  { %12 = vsyncpa [#allocation3 + $0x1], 0 }
   0x4   :  { %13 = vsyncpa [#allocation6], 0 }
   0x5   :  { %15 = vsyncpa [#allocation6 + $0x1], 0 }
   0x6   :  { %16 = vsyncpa [#allocation4], 0 }
   0x7   :  { %18 = vsyncpa [#allocation4 + $0x1], 0 }
   0x8   :  { %19 = vsyncpa [#allocation10], 0 }
   0x9   :  { %21 = vsyncpa [#allocation10 + $0x1], 0  ;;  %s1110_s15 = smov 0   ;;  %s1112_s16 = smov 0  }
   0xa   :  { %s1114_s17 = smov 0   ;;  %s1116_s18 = smov 0  }
   0xb   :  { %s1118_s19 = smov 0   ;;  %s1120_s20 = smov 0  }
   0xc   :  { %s1122_s21 = smov 0   ;;  %s1124_s22 = smov 0  }
   0xd LB: > { %1385 = sst [smem:[#allocation15_spill]] %s1068_s20  ;;  %s1151_s23 = sadd.s32 4294967295, %s1076_s22   ;;  %s1076_s22 = sphi %s1124_s22, %s27_s22   ;;  %s1072_s21 = sphi %s1122_s21, %s1404_s21   ;;  %s1068_s20 = sphi %s1120_s20, %s1403_s20   ;;  %s1064_s19 = sphi %s1118_s19, %s1402_s19   ;;  %s1060_s18 = sphi %s1116_s18, %s1401_s18   ;;  %s1056_s17 = sphi %s1114_s17, %s1407_s17   ;;  %s1052_s16 = sphi %s1112_s16, %s1406_s16   ;;  %s1048_s15 = sphi %s1110_s15, %s1405_s15  }
   0xe   : > { %1386 = sst [smem:[#allocation16_spill]] %s1072_s21  ;;  %s718_s24 = sadd.s32 4294967294, %s1076_s22  }
   0xf   : > { %s42_s25 = sadd.s32 1, %s1068_s20  ;;  %s46_s26 = sadd.s32 1, %s1072_s21 }
  0x10   : > { %p44_p0 = scmp.ge.s32.totalorder %s42_s25, 2  ;;  %s57_s27 = sadd.s32 1, %s1056_s17 }
  0x11   : > { %p64_p1 = scmp.ne.s32.totalorder %s1056_s17, %s1052_s16  ;;  %p65_p2 = scmp.eq.s32.totalorder %s1076_s22, 0 }
  0x12   : > { %s1409_s25 = smov (%p44_p0, %s42_s25), 0  ;;  %s1411_s26 = smov (!%p44_p0, %s46_s26), %s1072_s21 }
  0x13   : > { %1387 = sst [smem:[#allocation17_spill]] %s1409_s25  ;;  %s51_s28 = ssub.s32 %s1068_s20, %s1409_s25 }
  0x14   : > { %p1165_p3 = por %p65_p2, %p64_p1  ;;  %p48_p4 = scmp.ge.s32.totalorder %s1411_s26, 2 }
  0x15   : > { %p70_p5 = scmp.ne.s32.totalorder %s1052_s16, %s1048_s15  ;;  %p71_p6 = scmp.eq.s32.totalorder %s1151_s23, 0 }
  0x16   : > { %p154_p7 = scmp.eq.s32.totalorder %s1151_s23, 3  ;;  %s1413_s26 = smov (%p48_p4, %s1411_s26), 0 }
  0x17   : > { %1389 = sst [smem:[#allocation18_spill]] %s1413_s26  ;;  %p1175_p8 = por %p71_p6, %p70_p5 }
  0x18   : > { %p1179_p9 = por %p154_p7, %p64_p1  ;;  %s50_s6 = ssub.s32 %s1072_s21, %s1413_s26 }
  0x19   : > { %p160_p10 = scmp.eq.s32.totalorder %s718_s24, 3  ;;  %s52_s7 = sor.u32 %s51_s28, %s50_s6 }
  0x1a   : > { %p55_p11 = scmp.eq.s32.totalorder %s52_s7, 0  ;;  %p788_p13 = scmp.lt.s32.totalorder %s1076_s22, 4 }
  0x1b   : > { %p1185_p12 = por %p160_p10, %p70_p5  ;;  %s1378_s9 = sand.u32 1, %s1056_s17  }
  0x1c   : > { %s1192_s10 = scalar_select %p55_p11, %s1056_s17, %s57_s27  }
  0x1d   : > { %s1392_s8 = scalar_select %p1185_p12, 1, 0 }
  0x1e   : > { %1394 = sst [smem:[#allocation20_spill]] %s1192_s10  ;;  %s1196_s11 = sshll.u32 %s1378_s9, 3 }
  0x1f   : > { %1393 = sst [smem:[#allocation19_spill]] %s1392_s8  ;;  %s722_s12 = sshll.u32 %s1072_s21, 1 }
  0x20   : > { %s220_s13 = sadd.s32 %s1068_s20, %s722_s12  ;;  %p1202_p0 = pnand %p788_p13, %p1165_p3 }
  0x21   : > { %s1206_s24 = sshll.u32 %s220_s13, 7  ;;  %s231_s28 = sand.u32 1, %s1076_s22  }
  0x22   : > { %s1396_s1 = sld [smem:[#allocation21_spill]]  ;;  %s235_s9 = scalar_lea.vmem [#allocation5], %s1196_s11 }
  0x23   : > { %s244_s26 = sshll.u32 %s235_s9, 4  ;;  %p730_p1 = scmp.ge.s32.totalorder %s1076_s22, 1  ;;  %s245_s26 = int_to_ptr.vmem [resolvable:$true] %s244_s26 }
  0x24   : > { %p269_p2 = scmp.lt.s32.totalorder %s1076_s22, 5  ;;  %s1216_s29 = scalar_lea.sflag [#allocation6], %s231_s28 }
  0x25   : > { %p864_p3 = pneg %p1202_p0  ;;  %s875_s12 = scalar_lea.vmem %s245_s26, 128 }
  0x26   : > { %p876_p4 = scmp.ne.s32.totalorder %s245_s26, %s875_s12  ;;  %s1078_s13 = smov [#allocation5]  }
  0x27   : > { %s880_s25 = sshll.u32 %s1078_s13, 4  ;;  %s881_s25 = int_to_ptr.vmem [resolvable:$false] %s880_s25 }
  0x28   : > { %s242_s7 = scalar_lea.hbm %s1396_s1, %s1206_s24  ;;  %p878_p5 = pnand %p876_p4, %p864_p3 }
  0x29   : > { %s882_s6 = scalar_lea.vmem %s881_s25, 256  ;;  %p883_p7 = scmp.lt.s32.totalorder %s245_s26, %s881_s25 }
  0x2a   : > { %p879_p6 = pneg %p878_p5  ;;  %p884_p10 = scmp.lt.s32.totalorder %s882_s6, %s875_s12 }
  0x2c   : > { %p885_p11 = por %p884_p10, %p883_p7 }
  0x2e   : > { %p886_p13 = pnand %p885_p11, %p879_p6 }
  0x30   : > { %889 = shalt.err (!%p886_p13)
}
  0x31   : > { %777 = dma.hbm_to_vmem [thread:$0]  (!%p1202_p0), %s242_s7, 128, %s245_s26, %s1216_s29  }
  0x32   : > { %p1230_p4 = pnand %p730_p1, %p269_p2  ;;  %s222_s27 = scalar_lea.hbm %s1373_s0, %s1206_s24 }
  0x33   : > { %s214_s12 = scalar_lea.vmem [#allocation2], %s1196_s11  ;;  %s262_s21 = scalar_lea.hbm %s1375_s2, %s1206_s24 }
  0x34   : > { %s224_s13 = sshll.u32 %s214_s12, 4  ;;  %s1398_s20 = sand.u32 1, %s1056_s17   ;;  %s225_s13 = int_to_ptr.vmem [resolvable:$true] %s224_s13 }
  0x35   : > { %s211_s10 = scalar_lea.sflag [#allocation3], %s1398_s20  ;;  %s903_s26 = scalar_lea.vmem %s225_s13, 128 }
  0x36   : > { %p904_p5 = scmp.ne.s32.totalorder %s225_s13, %s903_s26  ;;  %s1079_s7 = smov [#allocation2]  }
  0x37   : > { %s908_s8 = sshll.u32 %s1079_s7, 4  ;;  %s909_s8 = int_to_ptr.vmem [resolvable:$false] %s908_s8 }
  0x38   : > { %p906_p1 = pnand %p904_p5, %p864_p3  ;;  %s910_s25 = scalar_lea.vmem %s909_s8, 256 }
  0x39   : > { %p911_p6 = scmp.lt.s32.totalorder %s225_s13, %s909_s8  ;;  %p912_p7 = scmp.lt.s32.totalorder %s910_s25, %s903_s26 }
  0x3a   : > { %p907_p2 = pneg %p906_p1 }
  0x3b   : > { %p913_p10 = por %p912_p7, %p911_p6 }
  0x3d   : > { %p914_p11 = pnand %p913_p10, %p907_p2 }
  0x3f   : > { %917 = shalt.err (!%p914_p11)
}
  0x40   : > { %774 = dma.hbm_to_vmem [thread:$0]  (!%p1202_p0), %s222_s27, 128, %s225_s13, %s211_s10  }
  0x41   : > { %s255_s1 = scalar_lea.vmem [#allocation7], %s1196_s11  ;;  %s1080_s12 = smov [#allocation7]  }
  0x42   : > { %s264_s20 = sshll.u32 %s255_s1, 4  ;;  %s936_s8 = sshll.u32 %s1080_s12, 4  ;;  %s265_s20 = int_to_ptr.vmem [resolvable:$true] %s264_s20  ;;  %s937_s8 = int_to_ptr.vmem [resolvable:$false] %s936_s8 }
  0x43   : > { %s931_s28 = scalar_lea.vmem %s265_s20, 128  ;;  %s938_s6 = scalar_lea.vmem %s937_s8, 256 }
  0x44   : > { %p932_p13 = scmp.ne.s32.totalorder %s265_s20, %s931_s28  ;;  %p939_p2 = scmp.lt.s32.totalorder %s265_s20, %s937_s8 }
  0x45   : > { %p940_p6 = scmp.lt.s32.totalorder %s938_s6, %s931_s28 }
  0x46   : > { %p934_p5 = pnand %p932_p13, %p864_p3 }
  0x47   : > { %p941_p7 = por %p940_p6, %p939_p2 }
  0x48   : > { %p935_p1 = pneg %p934_p5 }
  0x4a   : > { %p942_p10 = pnand %p941_p7, %p935_p1 }
  0x4c   : > { %945 = shalt.err (!%p942_p10)
}
  0x4d   : > { %780 = dma.hbm_to_vmem [thread:$0]  (!%p1202_p0), %s262_s21, 128, %s265_s20, %s1216_s29  }
  0x4e   : > { %273 = sbr.rel (%p1230_p4) target bundleno = 823 (0x337), region = 32  ;;  %s1265_s27 = sand.u32 (!%p1230_p4), 1, %s1052_s16  }
  0x4f   : > { %s1268_s13 = sshll.u32 (!%p1230_p4), %s1265_s27, 3  ;;  %s276_s14 = scalar_lea.sflag (!%p1230_p4), [#allocation3], %s1265_s27 }
  0x50   : > { %s279_s26 = scalar_lea.vmem (!%p1230_p4), [#allocation2], %s1268_s13 }
  0x53   : > { %1031 = dma.done.wait (%p1175_p8), %s276_s14, 128  }
  0x54   : > { %1033 = vsyncadd (%p1175_p8), %s276_s14, 4294967168  ;;  %s284_s21 = sand.u32 1, %s1151_s23   ;;  %s288_s29 = scalar_lea.vmem [#allocation5], %s1268_s13 }
  0x55   : > { %s285_s24 = scalar_lea.sflag [#allocation6], %s284_s21 }
  0x56   : > { %1035 = dma.done.wait (%p1175_p8), %s285_s24, 256  }
  0x57   : > { %1037 = vsyncadd (%p1175_p8), %s285_s24, 4294967040  ;;  %v1081_v0 = vmov 0.0   ;;  %vm1082_vm0 = vmmov 0   ;;  %vm340_vm1 = vcmask 261120   ;;  %v338_v1 = vld [vmem:[%s288_s29] sm:$0xff]  ;;  %v337_v2 = vld [vmem:[%s279_s26] sm:$0xff] }
  0x58   : > { %751 = vmatprep.subr.mxu0 %v1081_v0  ;;  %753 = vmatprep.mubr.msk.f32.mxu0 %vm1082_vm0, %v1081_v0  ;;  %vm418_vm2 = vcmask 64512   ;;  %s297_s23 = scalar_lea.vmem [#allocation7], %s1268_s13  ;;  %s336_s30 = scalar_lea.vmem [#allocation9], %s1268_s13 }
  0x59   : > { %756 = vmatprep.subr.mxu1 %v1081_v0  ;;  %758 = vmatprep.mubr.msk.f32.mxu1 %vm1082_vm0, %v1081_v0  ;;  %v339_v14 = vld [vmem:[%s297_s23] sm:$0xff]  ;;  %s741_s9 = sshll.u32 %s1064_s19, 1  ;;  %s545_s12 = sshll.u32 %s336_s30, 4  ;;  %s546_s12 = int_to_ptr.vmem [resolvable:$true] %s545_s12 }
  0x5a   : > { %752 = vmatpush3.xpose.msk.msra.mxu0 %vm340_vm1, %v338_v1  ;;  %757 = vmatpush3.msra.mxu1 %v339_v14  ;;  %s1292_s7 = sadd.s32 %s1060_s18, %s741_s9  ;;  %s513_s8 = scalar_lea.sflag [#allocation10], %s1265_s27 }
  0x5b   : > { %s742_s25 = sshll.u32 %s1292_s7, 7  ;;  %s946_s6 = scalar_lea.vmem %s546_s12, 128 }
  0x5c   : > { %s543_s28 = scalar_lea.hbm %s1377_s4, %s742_s25  ;;  %p947_p8 = scmp.ne.s32.totalorder %s546_s12, %s946_s6 }
  0x5d   : > { %754 = vmatmul.mubr.msk.f32.vlgmr.msra.gmra.mxu0 %vm340_vm1, %v337_v2  ;;  %s1083_s10 = smov [#allocation9]  }
  0x5e   : > { %p948_p0 = pnand %p947_p8, %p1179_p9  ;;  %s950_s19 = sshll.u32 %s1083_s10, 4  ;;  %s951_s19 = int_to_ptr.vmem [resolvable:$false] %s950_s19 }
  0x5f   : > { %s952_s18 = scalar_lea.vmem %s951_s19, 256  ;;  %p953_p4 = scmp.lt.s32.totalorder %s546_s12, %s951_s19 }
  0x60   : > { %p949_p3 = pneg %p948_p0  ;;  %p954_p11 = scmp.lt.s32.totalorder %s952_s18, %s946_s6 }
  0x62   : > { %p955_p13 = por %p954_p11, %p953_p4 }
  0x64   : > { %p956_p5 = pnand %p955_p13, %p949_p3 }
 0x11d   : > { %v413_v3 = vpop.f32.mrf.mxu0 }
 0x11e   : > { %v417_v4 = vmul.f32 %v413_v3, %v413_v3 }
 0x11f   : > { %v755_v5 = vpop.f32.mrf.mxu0 }
 0x120   : > { %v419_v6 = vsel %vm418_vm2, %v417_v4, 0.0 }
 0x121   : > { %420 = vadd.xlane.f32.xlu0 %v419_v6 }
 0x1aa   : > { %v421_v7 = vpop.xlane.xlu0 %420 }
 0x1ab   : > { %v422_v8 = vmax.f32 %v421_v7, 1e-24 }
 0x1ad   : > { %856 = vrsqrt.f32 %v422_v8 }
 0x1ba   : > { %v857_v9 = vpop.eup %856 }
 0x1bb   : > { %v424_v10 = vmul.f32 %v857_v9, %v413_v3 }
 0x1bd   : > { %v425_v11 = vmul.f32 1.442695, %v424_v10 }
 0x1bf   : > { %858 = vpow2.f32 %v425_v11 }
 0x1cc   : > { %v859_v12 = vpop.eup %858 }
 0x1cd   : > { %v427_v13 = vsel %vm418_vm2, %v859_v12, 0.0 }
 0x1ce   : > { %428 = vadd.xlane.f32.xlu0 %v427_v13 }
 0x257   : > { %v429_v15 = vpop.xlane.xlu0 %428 }
 0x258   : > { %860 = vrcp.f32 %v429_v15 }
 0x265   : > { %v861_v16 = vpop.eup %860 }
 0x266   : > { %v431_v17 = vmul.f32 %v861_v16, %v859_v12 }
 0x268   : > { %759 = vmatmul.mubr.msk.f32.vlgmr.msra.gmra.mxu1 %vm418_vm2, %v431_v17  ;;  %506 = vst.msk [vmem:[%s336_s30] sm:$0xff] %vm418_vm2, %v431_v17 }
 0x269   : > { %959 = shalt.err (!%p956_p5)
}
 0x26a   : > { %s960_s11 = scalar_lea.hbm %s543_s28, 128  ;;  %s964_s21 = scalar_lea.hbm %s1377_s4, 512 }
 0x26b   : > { %p961_p1 = scmp.ne.s32.totalorder %s543_s28, %s960_s11  ;;  %p965_p7 = scmp.lt.s32.totalorder %s543_s28, %s1377_s4 }
 0x26c   : > { %p966_p10 = scmp.lt.s32.totalorder %s964_s21, %s960_s11 }
 0x26d   : > { %p962_p2 = pnand %p961_p1, %p1179_p9 }
 0x26e   : > { %p967_p8 = por %p966_p10, %p965_p7 }
 0x26f   : > { %p963_p6 = pneg %p962_p2 }
 0x271   : > { %p968_p0 = pnand %p967_p8, %p963_p6 }
 0x273   : > { %971 = shalt.err (!%p968_p0)
}
 0x274   : > { %768 = dma.vmem_to_hbm [thread:$0]  (%p1179_p9), %s546_s12, 128, %s543_s28, %s513_s8  }
 0x275   : > { %s329_s23 = scalar_lea.vmem [#allocation8], %s1268_s13  ;;  %s1319_s20 = scalar_lea.hbm %s1376_s3, %s742_s25 }
 0x276   : > { %s529_s30 = sshll.u32 %s329_s23, 4  ;;  %s508_s6 = scalar_lea.sflag [#allocation4], %s1265_s27  ;;  %s1321_s30 = int_to_ptr.vmem [resolvable:$true] %s529_s30 }
 0x277   : > { %s972_s10 = scalar_lea.vmem %s1321_s30, 128  ;;  %s1084_s13 = smov [#allocation8]  }
 0x278   : > { %p973_p3 = scmp.ne.s32.totalorder %s1321_s30, %s972_s10  ;;  %s976_s7 = sshll.u32 %s1084_s13, 4  ;;  %s977_s7 = int_to_ptr.vmem [resolvable:$false] %s976_s7 }
 0x279   : > { %s978_s25 = scalar_lea.vmem %s977_s7, 256  ;;  %p979_p13 = scmp.lt.s32.totalorder %s1321_s30, %s977_s7 }
 0x27a   : > { %p974_p4 = pnand %p973_p3, %p1179_p9  ;;  %p980_p5 = scmp.lt.s32.totalorder %s978_s25, %s972_s10 }
 0x27c   : > { %p975_p11 = pneg %p974_p4  ;;  %p981_p1 = por %p980_p5, %p979_p13 }
 0x27e   : > { %p982_p2 = pnand %p981_p1, %p975_p11 }
 0x328   : > { %v501_v18 = vpop.f32.mrf.mxu1 }
 0x329   : > { %505 = vst.msk [vmem:[%s329_s23] sm:$0xff] %vm340_vm1, %v501_v18 }
 0x32a   : > { %v760_v19 = vpop.f32.mrf.mxu1 }
 0x32b   : > { %985 = shalt.err (!%p982_p2)
}
 0x32c   : > { %s986_s28 = scalar_lea.hbm %s1319_s20, 128  ;;  %s990_s8 = scalar_lea.hbm %s1376_s3, 512 }
 0x32d   : > { %p987_p6 = scmp.ne.s32.totalorder %s1319_s20, %s986_s28  ;;  %p991_p8 = scmp.lt.s32.totalorder %s1319_s20, %s1376_s3 }
 0x32e   : > { %p992_p0 = scmp.lt.s32.totalorder %s990_s8, %s986_s28 }
 0x32f   : > { %p988_p7 = pnand %p987_p6, %p1179_p9 }
 0x330   : > { %p993_p3 = por %p992_p0, %p991_p8 }
 0x331   : > { %p989_p10 = pneg %p988_p7 }
 0x333   : > { %p994_p4 = pnand %p993_p3, %p989_p10 }
 0x335   : > { %997 = shalt.err (!%p994_p4)
}
 0x336   : > { %767 = dma.vmem_to_hbm [thread:$0]  (%p1179_p9), %s1321_s30, 128, %s1319_s20, %s508_s6  }
 0x337 PF: > { %p789_p11 = scmp.ge.s32.totalorder %s1076_s22, 2  ;;  %s557_s14 = sand.u32 1, %s1048_s15  }
 0x338   : > { %s558_s26 = scalar_lea.sflag [#allocation4], %s557_s14 }
 0x339   : > { %p782_p13 = pnand %p789_p11, %p1185_p12 }
 0x33b   : > { %p783_p5 = pneg %p782_p13 }
 0x33d   : > { %1039 = dma.done.wait (%p783_p5), %s558_s26, 128  }
 0x33e   : > { %1041 = vsyncadd (%p783_p5), %s558_s26, 4294967168  ;;  %s567_s21 = scalar_lea.sflag [#allocation10], %s557_s14 }
 0x33f   : > { %1043 = dma.done.wait (%p783_p5), %s567_s21, 128  }
 0x340   : > { %1045 = vsyncadd (%p783_p5), %s567_s21, 4294967168  ;;  %s27_s22 = sadd.s32 1, %s1076_s22   ;;  %s1400_s5 = sld [smem:[#allocation20_spill]] }
 0x341   : > { %p24_p1 = scmp.ge.s32.totalorder %s27_s22, 6   ;;  %s1401_s18 = sld [smem:[#allocation15_spill]] }
 0x342   : > { %s1402_s19 = sld [smem:[#allocation16_spill]]  ;;  %s1405_s15 = smov %s1052_s16 }
 0x343   : > { %s1403_s20 = sld [smem:[#allocation17_spill]]  ;;  %s1406_s16 = smov %s1056_s17 }
 0x344   : > { %s1404_s21 = sld [smem:[#allocation18_spill]]  ;;  %26 = sbr.rel (!%p24_p1) target bundleno = 13 (0xd), region = 118 }
 0x346   : > { %s1407_s17 = smov %s1400_s5 }
 0x349   :  { %572 = vsyncpa [#allocation3], 1 }
 0x34a   :  { %574 = vsyncpa [#allocation3 + $0x1], 1 }
 0x34b   :  { %575 = vsyncpa [#allocation6], 1 }
 0x34c   :  { %577 = vsyncpa [#allocation6 + $0x1], 1 }
 0x34d   :  { %578 = vsyncpa [#allocation4], 1 }
 0x34e   :  { %580 = vsyncpa [#allocation4 + $0x1], 1 }
 0x34f   :  { %581 = vsyncpa [#allocation10], 1 }
 0x350   :  { %583 = vsyncpa [#allocation10 + $0x1], 1 }

</bundles_post_ra>
